<compile_context>
chip_gen: v5e
topology: v5e:2x2
jax: 0.10.0
libtpu: 0.0.40
codegen_flags: <defaults>
</compile_context>

<pallas_src>
import jax
import jax.numpy as jnp
from jax.experimental import pallas as pl
from jax.experimental.pallas import tpu as pltpu


def _round_up(x, m):
    return (x + m - 1) // m * m


def _make_resnet_block_kernel(H, W, Cinp, Coutp, has_proj):
    HW = H * W

    def _core(mask_ref, x_ref, w1_ref, s1_ref, b1_ref, w2_ref, s2_ref, b2_ref,
              out_ref, shortcut_fn):
        # Nine (1, HW) boundary masks (same for both 3x3 convs), loaded once.
        m = [mask_ref[t] for t in range(9)]          # each (1, HW) f32
        x = x_ref[0]                                 # (Cinp, HW) f32, lane-dense

        def taps(a):
            # a: (C, HW) f32 -> (9*C, HW) f32 im2col RHS for a 3x3 / pad=1 conv.
            # Tap (dy, dx) reads flat index p + s with s = (dy-1)*W + (dx-1);
            # out-of-bounds / wrong-row wraps are zeroed by the precomputed mask.
            parts = []
            for dy in range(3):
                for dx in range(3):
                    t = dy * 3 + dx
                    s = (dy - 1) * W + (dx - 1)
                    shifted = a if s == 0 else jnp.roll(a, -s, axis=1)
                    parts.append(shifted * m[t])
            # Pieces have a multiple-of-8 sublane count -> aligned concatenation.
            return jnp.concatenate(parts, axis=0)

        # -------- conv1 (3x3, pad=1): one MXU matmul, K = 9*Cinp --------
        rhs1 = taps(x).astype(jnp.bfloat16)                       # (9*Cinp, HW)
        acc1 = jnp.dot(w1_ref[...], rhs1,
                       preferred_element_type=jnp.float32)        # (Coutp, HW) f32
        h1 = jnp.maximum(acc1 * s1_ref[...] + b1_ref[...], 0.0)   # BN + ReLU (f32)
        # Dropout: identity in inference mode.

        # -------- conv2 (3x3, pad=1) + BN: one MXU matmul, K = 9*Coutp --------
        rhs2 = taps(h1).astype(jnp.bfloat16)                      # (9*Coutp, HW)
        acc2 = jnp.dot(w2_ref[...], rhs2,
                       preferred_element_type=jnp.float32)
        h2 = acc2 * s2_ref[...] + b2_ref[...]

        out = jnp.maximum(h2 + shortcut_fn(x), 0.0)
        out_ref[0] = out.astype(out_ref.dtype)       # lane-dense (Coutp, HW) store

    if has_proj:
        def kernel(mask_ref, x_ref, w1_ref, s1_ref, b1_ref, w2_ref, s2_ref,
                   b2_ref, wsc_ref, ssc_ref, bsc_ref, out_ref):
            def shortcut(x):
                # 1x1 projection conv + BN; BN scale applied in f32 after the matmul.
                y = jnp.dot(wsc_ref[...], x.astype(jnp.bfloat16),
                            preferred_element_type=jnp.float32)
                return y * ssc_ref[...] + bsc_ref[...]
            _core(mask_ref, x_ref, w1_ref, s1_ref, b1_ref, w2_ref, s2_ref,
                  b2_ref, out_ref, shortcut)
    else:
        def kernel(mask_ref, x_ref, w1_ref, s1_ref, b1_ref, w2_ref, s2_ref,
                   b2_ref, out_ref):
            def shortcut(x):
                return x          # identity shortcut: exact f32 residual add
            _core(mask_ref, x_ref, w1_ref, s1_ref, b1_ref, w2_ref, s2_ref,
                  b2_ref, out_ref, shortcut)
    return kernel


def _fold_bn(conv_bias, gamma, beta, mean, var, eps=1e-5):
    s = gamma / jnp.sqrt(var + eps)
    shift = s * (conv_bias - mean) + beta
    return s, shift


def resnet_block_forward(x_nchw, p):
    B, Cin, H, W = x_nchw.shape
    Cout = p["w1"].shape[0]
    HW = H * W
    eps = 1e-5
    has_proj = p.get("wsc") is not None
    if not has_proj:
        assert Cin == Cout, "identity shortcut requires in_channels == out_channels"

    Cinp = _round_up(Cin, 8)
    Coutp = _round_up(Cout, 8)

    # Keep NCHW: flatten spatial dims into the lane dimension (reshape only — no
    # transpose / pad / im2col HBM passes).  Channels padded to a multiple of 8.
    x = x_nchw.reshape(B, Cin, HW).astype(jnp.float32)
    if Cinp != Cin:
        x = jnp.pad(x, ((0, 0), (0, Cinp - Cin), (0, 0)))

    # Per-tap validity masks for a 3x3 / pad=1 conv: mask[t, 0, y*W+x] = 1 iff tap
    # (dy, dx) = (t//3, t%3) reads an in-bounds pixel for output (y, x).
    yy, xx = jnp.meshgrid(jnp.arange(H), jnp.arange(W), indexing="ij")
    m_list = []
    for dy in range(3):
        for dx in range(3):
            m = ((yy + dy - 1 >= 0) & (yy + dy - 1 < H) &
                 (xx + dx - 1 >= 0) & (xx + dx - 1 < W))
            m_list.append(m.reshape(HW))
    masks = jnp.stack(m_list, axis=0).reshape(9, 1, HW).astype(jnp.float32)

    def conv_w(w, cip, cop):    # (Co,Ci,3,3) -> (cop, 9*cip), K ordered (dy,dx,ci)
        co, ci = w.shape[0], w.shape[1]
        wt = jnp.transpose(w, (0, 2, 3, 1))                       # (Co,3,3,Ci)
        wt = jnp.pad(wt, ((0, cop - co), (0, 0), (0, 0), (0, cip - ci)))
        return wt.reshape(cop, 9 * cip).astype(jnp.bfloat16)

    def col(v):                 # (Cout,) -> (Coutp, 1) f32
        return jnp.pad(v, (0, Coutp - Cout)).reshape(Coutp, 1).astype(jnp.float32)

    s1, b1 = _fold_bn(p["b1"], p["g1"], p["beta1"], p["m1"], p["v1"], eps)
    s2, b2 = _fold_bn(p["b2"], p["g2"], p["beta2"], p["m2"], p["v2"], eps)

    const2 = lambda b: (0, 0)
    const3 = lambda b: (0, 0, 0)

    inputs = [masks, x,
              conv_w(p["w1"], Cinp, Coutp), col(s1), col(b1),
              conv_w(p["w2"], Coutp, Coutp), col(s2), col(b2)]
    in_specs = [
        pl.BlockSpec((9, 1, HW), const3),
        pl.BlockSpec((1, Cinp, HW), lambda b: (b, 0, 0)),
        pl.BlockSpec((Coutp, 9 * Cinp), const2),
        pl.BlockSpec((Coutp, 1), const2),
        pl.BlockSpec((Coutp, 1), const2),
        pl.BlockSpec((Coutp, 9 * Coutp), const2),
        pl.BlockSpec((Coutp, 1), const2),
        pl.BlockSpec((Coutp, 1), const2),
    ]
    if has_proj:
        ssc, bsc = _fold_bn(p["bsc"], p["gsc"], p["betasc"], p["msc"], p["vsc"], eps)
        wsc = p["wsc"][:, :, 0, 0]                                # (Cout, Cin)
        wsc = jnp.pad(wsc, ((0, Coutp - Cout), (0, Cinp - Cin))).astype(jnp.bfloat16)
        inputs += [wsc, col(ssc), col(bsc)]
        in_specs += [pl.BlockSpec((Coutp, Cinp), const2),
                     pl.BlockSpec((Coutp, 1), const2),
                     pl.BlockSpec((Coutp, 1), const2)]

    kernel_fn = _make_resnet_block_kernel(H, W, Cinp, Coutp, has_proj)

    out = pl.pallas_call(
        kernel_fn,
        out_shape=jax.ShapeDtypeStruct((B, Coutp, HW), jnp.float32),
        grid_spec=pltpu.PrefetchScalarGridSpec(
            num_scalar_prefetch=0,
            grid=(B,),
            in_specs=in_specs,
            out_specs=pl.BlockSpec((1, Coutp, HW), lambda b: (b, 0, 0)),
        ),
        compiler_params=pltpu.CompilerParams(
            dimension_semantics=("parallel",),
            vmem_limit_bytes=48 * 1024 * 1024),   # <= v7x physical 64 MiB
    )(*inputs)

    if Coutp != Cout:
        out = out[:, :Cout, :]
    return out.reshape(B, Cout, H, W)             # already NCHW: reshape only


# ------------------------- pure-JAX reference (for checking) -------------------------
def resnet_block_ref(x, p):
    eps = 1e-5
    dn = ("NCHW", "OIHW", "NCHW")

    def conv(x, w, b, pad=1):
        y = jax.lax.conv_general_dilated(x, w, (1, 1), ((pad, pad), (pad, pad)),
                                         dimension_numbers=dn)
        return y + b[None, :, None, None]

    def bn(y, g, beta, m, v):
        return ((y - m[None, :, None, None]) /
                jnp.sqrt(v[None, :, None, None] + eps) *
                g[None, :, None, None] + beta[None, :, None, None])

    out = jax.nn.relu(bn(conv(x, p["w1"], p["b1"]),
                         p["g1"], p["beta1"], p["m1"], p["v1"]))
    out = bn(conv(out, p["w2"], p["b2"]), p["g2"], p["beta2"], p["m2"], p["v2"])
    if p.get("wsc") is not None:
        sc = bn(conv(x, p["wsc"], p["bsc"], pad=0),
                p["gsc"], p["betasc"], p["msc"], p["vsc"])
    else:
        sc = x
    return jax.nn.relu(out + sc)


if __name__ == "__main__":
    key = jax.random.PRNGKey(0)
    ks = jax.random.split(key, 24)

    def n(k, shape, scale=0.1):
        return scale * jax.random.normal(k, shape, jnp.float32)

    def u(k, shape):
        return jax.random.uniform(k, shape, jnp.float32, 0.5, 1.5)

    def make_params(keys, cin, cout, with_proj):
        p = dict(
            w1=n(keys[0], (cout, cin, 3, 3)), b1=n(keys[1], (cout,)),
            g1=u(keys[2], (cout,)), beta1=n(keys[3], (cout,)),
            m1=n(keys[4], (cout,)), v1=u(keys[5], (cout,)),
            w2=n(keys[6], (cout, cout, 3, 3)), b2=n(keys[7], (cout,)),
            g2=u(keys[8], (cout,)), beta2=n(keys[9], (cout,)),
            m2=n(keys[10], (cout,)), v2=u(keys[11], (cout,)),
        )
        if with_proj:
            p.update(
                wsc=n(keys[12], (cout, cin, 1, 1)), bsc=n(keys[13], (cout,)),
                gsc=u(keys[14], (cout,)), betasc=n(keys[15], (cout,)),
                msc=n(keys[16], (cout,)), vsc=u(keys[17], (cout,)),
            )
        return p

    def check(x, p):
        out = jax.block_until_ready(resnet_block_forward(x, p))
        ref = resnet_block_ref(x, p)
        assert out.shape == ref.shape
        err = jnp.abs(out - ref)
        max_err = float(jnp.max(err))
        mean_err = float(jnp.mean(err))
        # bf16 MXU inputs (f32 accumulate) -> loose but meaningful tolerances.
        if max_err > 1e-1 or mean_err > 2e-2:
            raise AssertionError(
                f"kernel mismatch vs reference: max {max_err}, mean {mean_err}")

    # ---- projection-shortcut block (in_channels != out_channels) ----
    B, Cin, Cout, H, W = 2, 4, 8, 16, 16
    p1 = make_params(ks[:18], Cin, Cout, with_proj=True)
    x1 = jax.random.normal(ks[18], (B, Cin, H, W), jnp.float32)
    check(x1, p1)

    # ---- identity-shortcut block (in_channels == out_channels) ----
    p2 = make_params(ks[:18], Cout, Cout, with_proj=False)
    x2 = jax.random.normal(ks[19], (B, Cout, H, W), jnp.float32)
    check(x2, p2)

    print("KERNEL_OK")
</pallas_src>

<mosaic_0001>
module attributes {stable_mosaic.version = 11 : i64} {
  func.func @kernel(%arg0: i32, %arg1: memref<9x1x256xf32, #tpu.memory_space<vmem>>, %arg2: memref<1x8x256xf32, #tpu.memory_space<vmem>>, %arg3: memref<8x72xbf16, #tpu.memory_space<vmem>>, %arg4: memref<8x1xf32, #tpu.memory_space<vmem>>, %arg5: memref<8x1xf32, #tpu.memory_space<vmem>>, %arg6: memref<8x72xbf16, #tpu.memory_space<vmem>>, %arg7: memref<8x1xf32, #tpu.memory_space<vmem>>, %arg8: memref<8x1xf32, #tpu.memory_space<vmem>>, %arg9: memref<8x8xbf16, #tpu.memory_space<vmem>>, %arg10: memref<8x1xf32, #tpu.memory_space<vmem>>, %arg11: memref<8x1xf32, #tpu.memory_space<vmem>>, %arg12: memref<1x8x256xf32, #tpu.memory_space<vmem>>) attributes {dimension_semantics = [#tpu.dimension_semantics<parallel>], iteration_bounds = array<i64: 2>, scalar_prefetch = 0 : i64, scratch_operands = 0 : i64, tpu.core_type = #tpu.core_type<tc>, window_params = [{pipeline_mode = #tpu.pipeline_mode<synchronous>, transform_indices = @transform_0, window_bounds = array<i64: 9, 1, 256>}, {transform_indices = @transform_1, window_bounds = array<i64: 1, 8, 256>}, {pipeline_mode = #tpu.pipeline_mode<synchronous>, transform_indices = @transform_2, window_bounds = array<i64: 8, 72>}, {pipeline_mode = #tpu.pipeline_mode<synchronous>, transform_indices = @transform_3, window_bounds = array<i64: 8, 1>}, {pipeline_mode = #tpu.pipeline_mode<synchronous>, transform_indices = @transform_4, window_bounds = array<i64: 8, 1>}, {pipeline_mode = #tpu.pipeline_mode<synchronous>, transform_indices = @transform_5, window_bounds = array<i64: 8, 72>}, {pipeline_mode = #tpu.pipeline_mode<synchronous>, transform_indices = @transform_6, window_bounds = array<i64: 8, 1>}, {pipeline_mode = #tpu.pipeline_mode<synchronous>, transform_indices = @transform_7, window_bounds = array<i64: 8, 1>}, {pipeline_mode = #tpu.pipeline_mode<synchronous>, transform_indices = @transform_8, window_bounds = array<i64: 8, 8>}, {pipeline_mode = #tpu.pipeline_mode<synchronous>, transform_indices = @transform_9, window_bounds = array<i64: 8, 1>}, {pipeline_mode = #tpu.pipeline_mode<synchronous>, transform_indices = @transform_10, window_bounds = array<i64: 8, 1>}, {transform_indices = @transform_11, window_bounds = array<i64: 1, 8, 256>}]} {
    %c0 = arith.constant 0 : index
    %c0_0 = arith.constant 0 : index
    %c0_1 = arith.constant 0 : index
    %0 = vector.load %arg1[%c0, %c0_0, %c0_1] : memref<9x1x256xf32, #tpu.memory_space<vmem>>, vector<1x1x256xf32>
    %1 = vector.shape_cast %0 : vector<1x1x256xf32> to vector<1x256xf32>
    %c1 = arith.constant 1 : index
    %c0_2 = arith.constant 0 : index
    %c0_3 = arith.constant 0 : index
    %2 = vector.load %arg1[%c1, %c0_2, %c0_3] : memref<9x1x256xf32, #tpu.memory_space<vmem>>, vector<1x1x256xf32>
    %3 = vector.shape_cast %2 : vector<1x1x256xf32> to vector<1x256xf32>
    %c2 = arith.constant 2 : index
    %c0_4 = arith.constant 0 : index
    %c0_5 = arith.constant 0 : index
    %4 = vector.load %arg1[%c2, %c0_4, %c0_5] : memref<9x1x256xf32, #tpu.memory_space<vmem>>, vector<1x1x256xf32>
    %5 = vector.shape_cast %4 : vector<1x1x256xf32> to vector<1x256xf32>
    %c3 = arith.constant 3 : index
    %c0_6 = arith.constant 0 : index
    %c0_7 = arith.constant 0 : index
    %6 = vector.load %arg1[%c3, %c0_6, %c0_7] : memref<9x1x256xf32, #tpu.memory_space<vmem>>, vector<1x1x256xf32>
    %7 = vector.shape_cast %6 : vector<1x1x256xf32> to vector<1x256xf32>
    %c4 = arith.constant 4 : index
    %c0_8 = arith.constant 0 : index
    %c0_9 = arith.constant 0 : index
    %8 = vector.load %arg1[%c4, %c0_8, %c0_9] : memref<9x1x256xf32, #tpu.memory_space<vmem>>, vector<1x1x256xf32>
    %9 = vector.shape_cast %8 : vector<1x1x256xf32> to vector<1x256xf32>
    %c5 = arith.constant 5 : index
    %c0_10 = arith.constant 0 : index
    %c0_11 = arith.constant 0 : index
    %10 = vector.load %arg1[%c5, %c0_10, %c0_11] : memref<9x1x256xf32, #tpu.memory_space<vmem>>, vector<1x1x256xf32>
    %11 = vector.shape_cast %10 : vector<1x1x256xf32> to vector<1x256xf32>
    %c6 = arith.constant 6 : index
    %c0_12 = arith.constant 0 : index
    %c0_13 = arith.constant 0 : index
    %12 = vector.load %arg1[%c6, %c0_12, %c0_13] : memref<9x1x256xf32, #tpu.memory_space<vmem>>, vector<1x1x256xf32>
    %13 = vector.shape_cast %12 : vector<1x1x256xf32> to vector<1x256xf32>
    %c7 = arith.constant 7 : index
    %c0_14 = arith.constant 0 : index
    %c0_15 = arith.constant 0 : index
    %14 = vector.load %arg1[%c7, %c0_14, %c0_15] : memref<9x1x256xf32, #tpu.memory_space<vmem>>, vector<1x1x256xf32>
    %15 = vector.shape_cast %14 : vector<1x1x256xf32> to vector<1x256xf32>
    %c8 = arith.constant 8 : index
    %c0_16 = arith.constant 0 : index
    %c0_17 = arith.constant 0 : index
    %16 = vector.load %arg1[%c8, %c0_16, %c0_17] : memref<9x1x256xf32, #tpu.memory_space<vmem>>, vector<1x1x256xf32>
    %17 = vector.shape_cast %16 : vector<1x1x256xf32> to vector<1x256xf32>
    %c0_18 = arith.constant 0 : index
    %c0_19 = arith.constant 0 : index
    %c0_20 = arith.constant 0 : index
    %18 = vector.load %arg2[%c0_18, %c0_19, %c0_20] : memref<1x8x256xf32, #tpu.memory_space<vmem>>, vector<1x8x256xf32>
    %19 = vector.shape_cast %18 : vector<1x8x256xf32> to vector<8x256xf32>
    %20 = vector.extract_strided_slice %19 {offsets = [0, 239], sizes = [8, 17], strides = [1, 1]} : vector<8x256xf32> to vector<8x17xf32>
    %21 = vector.extract_strided_slice %19 {offsets = [0, 0], sizes = [8, 239], strides = [1, 1]} : vector<8x256xf32> to vector<8x239xf32>
    %22 = tpu.concatenate %20, %21 in 1 : vector<8x17xf32>, vector<8x239xf32> -> vector<8x256xf32>
    %23 = vector.broadcast %1 : vector<1x256xf32> to vector<8x256xf32>
    %24 = arith.mulf %22, %23 : vector<8x256xf32>
    %25 = vector.extract_strided_slice %19 {offsets = [0, 240], sizes = [8, 16], strides = [1, 1]} : vector<8x256xf32> to vector<8x16xf32>
    %26 = vector.extract_strided_slice %19 {offsets = [0, 0], sizes = [8, 240], strides = [1, 1]} : vector<8x256xf32> to vector<8x240xf32>
    %27 = tpu.concatenate %25, %26 in 1 : vector<8x16xf32>, vector<8x240xf32> -> vector<8x256xf32>
    %28 = vector.broadcast %3 : vector<1x256xf32> to vector<8x256xf32>
    %29 = arith.mulf %27, %28 : vector<8x256xf32>
    %30 = vector.extract_strided_slice %19 {offsets = [0, 241], sizes = [8, 15], strides = [1, 1]} : vector<8x256xf32> to vector<8x15xf32>
    %31 = vector.extract_strided_slice %19 {offsets = [0, 0], sizes = [8, 241], strides = [1, 1]} : vector<8x256xf32> to vector<8x241xf32>
    %32 = tpu.concatenate %30, %31 in 1 : vector<8x15xf32>, vector<8x241xf32> -> vector<8x256xf32>
    %33 = vector.broadcast %5 : vector<1x256xf32> to vector<8x256xf32>
    %34 = arith.mulf %32, %33 : vector<8x256xf32>
    %35 = vector.extract_strided_slice %19 {offsets = [0, 255], sizes = [8, 1], strides = [1, 1]} : vector<8x256xf32> to vector<8x1xf32>
    %36 = vector.extract_strided_slice %19 {offsets = [0, 0], sizes = [8, 255], strides = [1, 1]} : vector<8x256xf32> to vector<8x255xf32>
    %37 = tpu.concatenate %35, %36 in 1 : vector<8x1xf32>, vector<8x255xf32> -> vector<8x256xf32>
    %38 = vector.broadcast %7 : vector<1x256xf32> to vector<8x256xf32>
    %39 = arith.mulf %37, %38 : vector<8x256xf32>
    %40 = vector.broadcast %9 : vector<1x256xf32> to vector<8x256xf32>
    %41 = arith.mulf %19, %40 : vector<8x256xf32>
    %42 = vector.extract_strided_slice %19 {offsets = [0, 1], sizes = [8, 255], strides = [1, 1]} : vector<8x256xf32> to vector<8x255xf32>
    %43 = vector.extract_strided_slice %19 {offsets = [0, 0], sizes = [8, 1], strides = [1, 1]} : vector<8x256xf32> to vector<8x1xf32>
    %44 = tpu.concatenate %42, %43 in 1 : vector<8x255xf32>, vector<8x1xf32> -> vector<8x256xf32>
    %45 = vector.broadcast %11 : vector<1x256xf32> to vector<8x256xf32>
    %46 = arith.mulf %44, %45 : vector<8x256xf32>
    %47 = vector.extract_strided_slice %19 {offsets = [0, 15], sizes = [8, 241], strides = [1, 1]} : vector<8x256xf32> to vector<8x241xf32>
    %48 = vector.extract_strided_slice %19 {offsets = [0, 0], sizes = [8, 15], strides = [1, 1]} : vector<8x256xf32> to vector<8x15xf32>
    %49 = tpu.concatenate %47, %48 in 1 : vector<8x241xf32>, vector<8x15xf32> -> vector<8x256xf32>
    %50 = vector.broadcast %13 : vector<1x256xf32> to vector<8x256xf32>
    %51 = arith.mulf %49, %50 : vector<8x256xf32>
    %52 = vector.extract_strided_slice %19 {offsets = [0, 16], sizes = [8, 240], strides = [1, 1]} : vector<8x256xf32> to vector<8x240xf32>
    %53 = vector.extract_strided_slice %19 {offsets = [0, 0], sizes = [8, 16], strides = [1, 1]} : vector<8x256xf32> to vector<8x16xf32>
    %54 = tpu.concatenate %52, %53 in 1 : vector<8x240xf32>, vector<8x16xf32> -> vector<8x256xf32>
    %55 = vector.broadcast %15 : vector<1x256xf32> to vector<8x256xf32>
    %56 = arith.mulf %54, %55 : vector<8x256xf32>
    %57 = vector.extract_strided_slice %19 {offsets = [0, 17], sizes = [8, 239], strides = [1, 1]} : vector<8x256xf32> to vector<8x239xf32>
    %58 = vector.extract_strided_slice %19 {offsets = [0, 0], sizes = [8, 17], strides = [1, 1]} : vector<8x256xf32> to vector<8x17xf32>
    %59 = tpu.concatenate %57, %58 in 1 : vector<8x239xf32>, vector<8x17xf32> -> vector<8x256xf32>
    %60 = vector.broadcast %17 : vector<1x256xf32> to vector<8x256xf32>
    %61 = arith.mulf %59, %60 : vector<8x256xf32>
    %62 = tpu.concatenate %24, %29, %34, %39, %41, %46, %51, %56, %61 in 0 : vector<8x256xf32>, vector<8x256xf32>, vector<8x256xf32>, vector<8x256xf32>, vector<8x256xf32>, vector<8x256xf32>, vector<8x256xf32>, vector<8x256xf32>, vector<8x256xf32> -> vector<72x256xf32>
    %63 = arith.truncf %62 : vector<72x256xf32> to vector<72x256xbf16>
    %c0_21 = arith.constant 0 : index
    %c0_22 = arith.constant 0 : index
    %64 = vector.load %arg3[%c0_21, %c0_22] : memref<8x72xbf16, #tpu.memory_space<vmem>>, vector<8x72xbf16>
    %cst = arith.constant dense<0.000000e+00> : vector<8x256xf32>
    %65 = tpu.matmul %64, %63, %cst {dimension_numbers = #tpu.dot_dimension_numbers<[1], [0], [0], [1], [0, 0, 1, 1], [], []>} : vector<8x72xbf16>, vector<72x256xbf16>, vector<8x256xf32> -> vector<8x256xf32>
    %c0_23 = arith.constant 0 : index
    %c0_24 = arith.constant 0 : index
    %66 = vector.load %arg4[%c0_23, %c0_24] : memref<8x1xf32, #tpu.memory_space<vmem>>, vector<8x1xf32>
    %67 = vector.broadcast %66 : vector<8x1xf32> to vector<8x256xf32>
    %68 = arith.mulf %65, %67 : vector<8x256xf32>
    %c0_25 = arith.constant 0 : index
    %c0_26 = arith.constant 0 : index
    %69 = vector.load %arg5[%c0_25, %c0_26] : memref<8x1xf32, #tpu.memory_space<vmem>>, vector<8x1xf32>
    %70 = vector.broadcast %69 : vector<8x1xf32> to vector<8x256xf32>
    %71 = arith.addf %68, %70 : vector<8x256xf32>
    %cst_27 = arith.constant 0.000000e+00 : f32
    %72 = vector.broadcast %cst_27 : f32 to vector<8x256xf32>
    %73 = arith.maximumf %71, %72 : vector<8x256xf32>
    %74 = vector.extract_strided_slice %73 {offsets = [0, 239], sizes = [8, 17], strides = [1, 1]} : vector<8x256xf32> to vector<8x17xf32>
    %75 = vector.extract_strided_slice %73 {offsets = [0, 0], sizes = [8, 239], strides = [1, 1]} : vector<8x256xf32> to vector<8x239xf32>
    %76 = tpu.concatenate %74, %75 in 1 : vector<8x17xf32>, vector<8x239xf32> -> vector<8x256xf32>
    %77 = vector.broadcast %1 : vector<1x256xf32> to vector<8x256xf32>
    %78 = arith.mulf %76, %77 : vector<8x256xf32>
    %79 = vector.extract_strided_slice %73 {offsets = [0, 240], sizes = [8, 16], strides = [1, 1]} : vector<8x256xf32> to vector<8x16xf32>
    %80 = vector.extract_strided_slice %73 {offsets = [0, 0], sizes = [8, 240], strides = [1, 1]} : vector<8x256xf32> to vector<8x240xf32>
    %81 = tpu.concatenate %79, %80 in 1 : vector<8x16xf32>, vector<8x240xf32> -> vector<8x256xf32>
    %82 = vector.broadcast %3 : vector<1x256xf32> to vector<8x256xf32>
    %83 = arith.mulf %81, %82 : vector<8x256xf32>
    %84 = vector.extract_strided_slice %73 {offsets = [0, 241], sizes = [8, 15], strides = [1, 1]} : vector<8x256xf32> to vector<8x15xf32>
    %85 = vector.extract_strided_slice %73 {offsets = [0, 0], sizes = [8, 241], strides = [1, 1]} : vector<8x256xf32> to vector<8x241xf32>
    %86 = tpu.concatenate %84, %85 in 1 : vector<8x15xf32>, vector<8x241xf32> -> vector<8x256xf32>
    %87 = vector.broadcast %5 : vector<1x256xf32> to vector<8x256xf32>
    %88 = arith.mulf %86, %87 : vector<8x256xf32>
    %89 = vector.extract_strided_slice %73 {offsets = [0, 255], sizes = [8, 1], strides = [1, 1]} : vector<8x256xf32> to vector<8x1xf32>
    %90 = vector.extract_strided_slice %73 {offsets = [0, 0], sizes = [8, 255], strides = [1, 1]} : vector<8x256xf32> to vector<8x255xf32>
    %91 = tpu.concatenate %89, %90 in 1 : vector<8x1xf32>, vector<8x255xf32> -> vector<8x256xf32>
    %92 = vector.broadcast %7 : vector<1x256xf32> to vector<8x256xf32>
    %93 = arith.mulf %91, %92 : vector<8x256xf32>
    %94 = vector.broadcast %9 : vector<1x256xf32> to vector<8x256xf32>
    %95 = arith.mulf %73, %94 : vector<8x256xf32>
    %96 = vector.extract_strided_slice %73 {offsets = [0, 1], sizes = [8, 255], strides = [1, 1]} : vector<8x256xf32> to vector<8x255xf32>
    %97 = vector.extract_strided_slice %73 {offsets = [0, 0], sizes = [8, 1], strides = [1, 1]} : vector<8x256xf32> to vector<8x1xf32>
    %98 = tpu.concatenate %96, %97 in 1 : vector<8x255xf32>, vector<8x1xf32> -> vector<8x256xf32>
    %99 = vector.broadcast %11 : vector<1x256xf32> to vector<8x256xf32>
    %100 = arith.mulf %98, %99 : vector<8x256xf32>
    %101 = vector.extract_strided_slice %73 {offsets = [0, 15], sizes = [8, 241], strides = [1, 1]} : vector<8x256xf32> to vector<8x241xf32>
    %102 = vector.extract_strided_slice %73 {offsets = [0, 0], sizes = [8, 15], strides = [1, 1]} : vector<8x256xf32> to vector<8x15xf32>
    %103 = tpu.concatenate %101, %102 in 1 : vector<8x241xf32>, vector<8x15xf32> -> vector<8x256xf32>
    %104 = vector.broadcast %13 : vector<1x256xf32> to vector<8x256xf32>
    %105 = arith.mulf %103, %104 : vector<8x256xf32>
    %106 = vector.extract_strided_slice %73 {offsets = [0, 16], sizes = [8, 240], strides = [1, 1]} : vector<8x256xf32> to vector<8x240xf32>
    %107 = vector.extract_strided_slice %73 {offsets = [0, 0], sizes = [8, 16], strides = [1, 1]} : vector<8x256xf32> to vector<8x16xf32>
    %108 = tpu.concatenate %106, %107 in 1 : vector<8x240xf32>, vector<8x16xf32> -> vector<8x256xf32>
    %109 = vector.broadcast %15 : vector<1x256xf32> to vector<8x256xf32>
    %110 = arith.mulf %108, %109 : vector<8x256xf32>
    %111 = vector.extract_strided_slice %73 {offsets = [0, 17], sizes = [8, 239], strides = [1, 1]} : vector<8x256xf32> to vector<8x239xf32>
    %112 = vector.extract_strided_slice %73 {offsets = [0, 0], sizes = [8, 17], strides = [1, 1]} : vector<8x256xf32> to vector<8x17xf32>
    %113 = tpu.concatenate %111, %112 in 1 : vector<8x239xf32>, vector<8x17xf32> -> vector<8x256xf32>
    %114 = vector.broadcast %17 : vector<1x256xf32> to vector<8x256xf32>
    %115 = arith.mulf %113, %114 : vector<8x256xf32>
    %116 = tpu.concatenate %78, %83, %88, %93, %95, %100, %105, %110, %115 in 0 : vector<8x256xf32>, vector<8x256xf32>, vector<8x256xf32>, vector<8x256xf32>, vector<8x256xf32>, vector<8x256xf32>, vector<8x256xf32>, vector<8x256xf32>, vector<8x256xf32> -> vector<72x256xf32>
    %117 = arith.truncf %116 : vector<72x256xf32> to vector<72x256xbf16>
    %c0_28 = arith.constant 0 : index
    %c0_29 = arith.constant 0 : index
    %118 = vector.load %arg6[%c0_28, %c0_29] : memref<8x72xbf16, #tpu.memory_space<vmem>>, vector<8x72xbf16>
    %cst_30 = arith.constant dense<0.000000e+00> : vector<8x256xf32>
    %119 = tpu.matmul %118, %117, %cst_30 {dimension_numbers = #tpu.dot_dimension_numbers<[1], [0], [0], [1], [0, 0, 1, 1], [], []>} : vector<8x72xbf16>, vector<72x256xbf16>, vector<8x256xf32> -> vector<8x256xf32>
    %c0_31 = arith.constant 0 : index
    %c0_32 = arith.constant 0 : index
    %120 = vector.load %arg7[%c0_31, %c0_32] : memref<8x1xf32, #tpu.memory_space<vmem>>, vector<8x1xf32>
    %121 = vector.broadcast %120 : vector<8x1xf32> to vector<8x256xf32>
    %122 = arith.mulf %119, %121 : vector<8x256xf32>
    %c0_33 = arith.constant 0 : index
    %c0_34 = arith.constant 0 : index
    %123 = vector.load %arg8[%c0_33, %c0_34] : memref<8x1xf32, #tpu.memory_space<vmem>>, vector<8x1xf32>
    %124 = vector.broadcast %123 : vector<8x1xf32> to vector<8x256xf32>
    %125 = arith.addf %122, %124 : vector<8x256xf32>
    %c0_35 = arith.constant 0 : index
    %c0_36 = arith.constant 0 : index
    %126 = vector.load %arg9[%c0_35, %c0_36] : memref<8x8xbf16, #tpu.memory_space<vmem>>, vector<8x8xbf16>
    %127 = arith.truncf %19 : vector<8x256xf32> to vector<8x256xbf16>
    %cst_37 = arith.constant dense<0.000000e+00> : vector<8x256xf32>
    %128 = tpu.matmul %126, %127, %cst_37 {dimension_numbers = #tpu.dot_dimension_numbers<[1], [0], [0], [1], [0, 0, 1, 1], [], []>} : vector<8x8xbf16>, vector<8x256xbf16>, vector<8x256xf32> -> vector<8x256xf32>
    %c0_38 = arith.constant 0 : index
    %c0_39 = arith.constant 0 : index
    %129 = vector.load %arg10[%c0_38, %c0_39] : memref<8x1xf32, #tpu.memory_space<vmem>>, vector<8x1xf32>
    %130 = vector.broadcast %129 : vector<8x1xf32> to vector<8x256xf32>
    %131 = arith.mulf %128, %130 : vector<8x256xf32>
    %c0_40 = arith.constant 0 : index
    %c0_41 = arith.constant 0 : index
    %132 = vector.load %arg11[%c0_40, %c0_41] : memref<8x1xf32, #tpu.memory_space<vmem>>, vector<8x1xf32>
    %133 = vector.broadcast %132 : vector<8x1xf32> to vector<8x256xf32>
    %134 = arith.addf %131, %133 : vector<8x256xf32>
    %135 = arith.addf %125, %134 : vector<8x256xf32>
    %cst_42 = arith.constant 0.000000e+00 : f32
    %136 = vector.broadcast %cst_42 : f32 to vector<8x256xf32>
    %137 = arith.maximumf %135, %136 : vector<8x256xf32>
    %c0_43 = arith.constant 0 : index
    %c0_44 = arith.constant 0 : index
    %c0_45 = arith.constant 0 : index
    %138 = vector.load %arg12[%c0_43, %c0_44, %c0_45] : memref<1x8x256xf32, #tpu.memory_space<vmem>>, vector<1x8x256xf32>
    %139 = vector.shape_cast %138 : vector<1x8x256xf32> to vector<8x256xf32>
    %140 = vector.shape_cast %137 : vector<8x256xf32> to vector<1x8x256xf32>
    tpu.vector_store %arg12[%c0_43, %c0_44, %c0_45], %140 {strides = array<i32>} : memref<1x8x256xf32, #tpu.memory_space<vmem>>, vector<1x8x256xf32>,
    return
  }
  func.func @transform_0(%arg0: i32) -> (i32, i32, i32) {
    %c0_i32 = arith.constant 0 : i32
    %c0_i32_0 = arith.constant 0 : i32
    %c0_i32_1 = arith.constant 0 : i32
    %c0_i32_2 = arith.constant 0 : i32
    return %c0_i32, %c0_i32_0, %c0_i32_1 : i32, i32, i32
  }
  func.func @transform_1(%arg0: i32) -> (i32, i32, i32) {
    %c0_i32 = arith.constant 0 : i32
    %c0_i32_0 = arith.constant 0 : i32
    %c0_i32_1 = arith.constant 0 : i32
    return %arg0, %c0_i32, %c0_i32_0 : i32, i32, i32
  }
  func.func @transform_2(%arg0: i32) -> (i32, i32) {
    %c0_i32 = arith.constant 0 : i32
    %c0_i32_0 = arith.constant 0 : i32
    %c0_i32_1 = arith.constant 0 : i32
    return %c0_i32, %c0_i32_0 : i32, i32
  }
  func.func @transform_3(%arg0: i32) -> (i32, i32) {
    %c0_i32 = arith.constant 0 : i32
    %c0_i32_0 = arith.constant 0 : i32
    %c0_i32_1 = arith.constant 0 : i32
    return %c0_i32, %c0_i32_0 : i32, i32
  }
  func.func @transform_4(%arg0: i32) -> (i32, i32) {
    %c0_i32 = arith.constant 0 : i32
    %c0_i32_0 = arith.constant 0 : i32
    %c0_i32_1 = arith.constant 0 : i32
    return %c0_i32, %c0_i32_0 : i32, i32
  }
  func.func @transform_5(%arg0: i32) -> (i32, i32) {
    %c0_i32 = arith.constant 0 : i32
    %c0_i32_0 = arith.constant 0 : i32
    %c0_i32_1 = arith.constant 0 : i32
    return %c0_i32, %c0_i32_0 : i32, i32
  }
  func.func @transform_6(%arg0: i32) -> (i32, i32) {
    %c0_i32 = arith.constant 0 : i32
    %c0_i32_0 = arith.constant 0 : i32
    %c0_i32_1 = arith.constant 0 : i32
    return %c0_i32, %c0_i32_0 : i32, i32
  }
  func.func @transform_7(%arg0: i32) -> (i32, i32) {
    %c0_i32 = arith.constant 0 : i32
    %c0_i32_0 = arith.constant 0 : i32
    %c0_i32_1 = arith.constant 0 : i32
    return %c0_i32, %c0_i32_0 : i32, i32
  }
  func.func @transform_8(%arg0: i32) -> (i32, i32) {
    %c0_i32 = arith.constant 0 : i32
    %c0_i32_0 = arith.constant 0 : i32
    %c0_i32_1 = arith.constant 0 : i32
    return %c0_i32, %c0_i32_0 : i32, i32
  }
  func.func @transform_9(%arg0: i32) -> (i32, i32) {
    %c0_i32 = arith.constant 0 : i32
    %c0_i32_0 = arith.constant 0 : i32
    %c0_i32_1 = arith.constant 0 : i32
    return %c0_i32, %c0_i32_0 : i32, i32
  }
  func.func @transform_10(%arg0: i32) -> (i32, i32) {
    %c0_i32 = arith.constant 0 : i32
    %c0_i32_0 = arith.constant 0 : i32
    %c0_i32_1 = arith.constant 0 : i32
    return %c0_i32, %c0_i32_0 : i32, i32
  }
  func.func @transform_11(%arg0: i32) -> (i32, i32, i32) {
    %c0_i32 = arith.constant 0 : i32
    %c0_i32_0 = arith.constant 0 : i32
    %c0_i32_1 = arith.constant 0 : i32
    return %arg0, %c0_i32, %c0_i32_0 : i32, i32, i32
  }
}

</mosaic_0001>

<bundles_post_ra>
// kernel: tpu_custom_call.1
= control target key start
LH: loop header
LB: loop body
LE: loop exit
PB: predicated region body
PF: predicated region fallthrough
CT: control target
= control target key end

     0   :  { %s1669_s0 = inlined_call_operand.hbm [shape: f32[9,1,256], index: 0, kind: input, shape index: {}]   ;;  %s1670_s1 = inlined_call_operand.hbm [shape: f32[2,8,256], index: 1, kind: input, shape index: {}]   ;;  %s1671_s2 = inlined_call_operand.vmem [shape: bf16[8,72], index: 2, kind: input, shape index: {}]   ;;  %s1672_s3 = inlined_call_operand.vmem [shape: f32[8,1], index: 3, kind: input, shape index: {}]   ;;  %s1673_s4 = inlined_call_operand.vmem [shape: f32[8,1], index: 4, kind: input, shape index: {}]   ;;  %s1674_s5 = inlined_call_operand.vmem [shape: bf16[8,72], index: 5, kind: input, shape index: {}]   ;;  %s1675_s6 = inlined_call_operand.vmem [shape: f32[8,1], index: 6, kind: input, shape index: {}]   ;;  %s1676_s7 = inlined_call_operand.vmem [shape: f32[8,1], index: 7, kind: input, shape index: {}]   ;;  %s1677_s8 = inlined_call_operand.vmem [shape: bf16[8,8], index: 8, kind: input, shape index: {}]   ;;  %s1678_s9 = inlined_call_operand.vmem [shape: f32[8,1], index: 9, kind: input, shape index: {}]   ;;  %s1679_s10 = inlined_call_operand.vmem [shape: f32[8,1], index: 10, kind: input, shape index: {}]   ;;  %s1680_s11 = inlined_call_operand.hbm [shape: f32[2,8,256], index: 11, kind: output, shape index: {}]  }
   0x1   :  { %1685 = sst [smem:[#allocation15_spill]] %s1669_s0 }
   0x2   :  { %16 = vsyncpa [#allocation3], 0 }
   0x3   :  { %17 = vsyncpa [#allocation6], 0 }
   0x4   :  { %19 = vsyncpa [#allocation6 + $0x1], 0 }
   0x5   :  { %20 = vsyncpa [#allocation4], 0 }
   0x6   :  { %22 = vsyncpa [#allocation4 + $0x1], 0  ;;  %s1266_s17 = smov 0   ;;  %s1268_s18 = smov 0  }
   0x7   :  { %s1270_s19 = smov 0   ;;  %s1272_s20 = smov 0  }
   0x8 LB: > { %1686 = sst [smem:[#allocation11_spill]] %s1188_s19  ;;  %s1290_s24 = sadd.s32 4294967295, %s1192_s20   ;;  %s1192_s20 = sphi %s1272_s20, %s1698_s20   ;;  %s1188_s19 = sphi %s1270_s19, %s1700_s19   ;;  %s1184_s18 = sphi %s1268_s18, %s1702_s18   ;;  %s1180_s17 = sphi %s1266_s17, %s1701_s17  }
   0x9   : > { %s1687_s0 = sld [smem:[#allocation15_spill]]  ;;  %p968_p0 = scmp.ge.s32.totalorder %s1192_s20, 1 }
   0xa   : > { %p70_p1 = scmp.eq.s32.totalorder %s1290_s24, 0  ;;  %p295_p2 = scmp.lt.s32.totalorder %s1192_s20, 3 }
   0xb   : > { %s1194_s26 = smov [#allocation2]   ;;  %s1195_s28 = smov 32  }
   0xc   : > { %p1295_p3 = pnand %p968_p0, %p295_p2  ;;  %s308_s27 = sshll.u32 %s1194_s26, 4  ;;  %s309_s27 = int_to_ptr.vmem [resolvable:$true] %s308_s27 }
   0xd   : > { %s1196_s29 = smov 2   ;;  %s967_s30 = sadd.s32 4294967294, %s1192_s20  }
   0xe   : > { %p999_p4 = pneg %p1295_p3  ;;  %s1306_s12 = sadd.s32 1, %s1192_s20  }
   0xf   : > { %s306_s23 = sshll.u32 %s1687_s0, 4  ;;  %1689 = sst [smem:[#allocation12_spill]] %s1306_s12  ;;  %s307_s23 = int_to_ptr.hbm [resolvable:$true] %s306_s23 }
  0x10   : > { %p1000_p6 = pnand %p999_p4, %p70_p1  ;;  %s56_s13 = sadd.s32 1, %s1188_s19 }
  0x11   : > { %s53_s14 = ssub.s32 %s1192_s20, %s1306_s12  ;;  %p63_p7 = scmp.ne.s32.totalorder %s1188_s19, %s1184_s18 }
  0x12   : > { %1002 = dma.hbm_to_vmem [thread:$0]  (!%p1000_p6), %s307_s23, 288, %s309_s27, [#allocation3], %s1195_s28, %s1195_s28, %s1196_s29  }
  0x13   : > { %p54_p8 = scmp.eq.s32.totalorder %s53_s14, 0  ;;  %p64_p9 = scmp.eq.s32.totalorder %s1192_s20, 0 }
  0x14   : > { %p69_p10 = scmp.ne.s32.totalorder %s1184_s18, %s1180_s17  ;;  %p282_p11 = scmp.eq.s32.totalorder %s1290_s24, 1 }
  0x15   : > { %s1318_s15 = scalar_select %p54_p8, %s1188_s19, %s56_s13  }
  0x16   : > { %p1322_p12 = por %p70_p1, %p69_p10  ;;  %p1326_p13 = por %p282_p11, %p63_p7 }
  0x17   : > { %1690 = sst [smem:[#allocation13_spill]] %s1318_s15  ;;  %p288_p0 = scmp.eq.s32.totalorder %s967_s30, 1 }
  0x18   : > { %p65_p2 = por %p64_p9, %p63_p7  ;;  %s349_s22 = sand.u32 1, %s1188_s19  }
  0x19   : > { %p1331_p4 = por %p288_p0, %p69_p10  ;;  %p1012_p6 = scmp.lt.s32.totalorder %s1192_s20, 2 }
  0x1a   : > { %s971_s26 = sshll.u32 %s349_s22, 4  ;;  %s989_s27 = sshll.u32 %s1192_s20, 4 }
  0x1b   : > { %s1693_s23 = scalar_select %p1331_p4, 1, 0 }
  0x1c   : > { %s358_s13 = scalar_lea.hbm %s1670_s1, %s989_s27  ;;  %s353_s0 = scalar_lea.vmem [#allocation5], %s971_s26 }
  0x1d   : > { %1694 = sst [smem:[#allocation14_spill]] %s1693_s23  ;;  %s360_s14 = sshll.u32 %s358_s13, 4  ;;  %s361_s14 = int_to_ptr.hbm [resolvable:$true] %s360_s14 }
  0x1e   : > { %s362_s15 = sshll.u32 %s353_s0, 4  ;;  %p1340_p8 = pnand %p1012_p6, %p65_p2  ;;  %s363_s15 = int_to_ptr.vmem [resolvable:$true] %s362_s15 }
  0x1f   : > { %s350_s19 = scalar_lea.sflag [#allocation6], %s349_s22  ;;  %s1092_s12 = sshra.s32 %s361_s14, 4  ;;  %s1093_s12 = int_to_ptr.hbm [resolvable:$true] %s1092_s12 }
  0x20   : > { %s1094_s23 = scalar_lea.hbm %s1093_s12, 16  ;;  %p1096_p9 = pneg %p1340_p8 }
  0x21   : > { %p1095_p7 = scmp.ne.s32.totalorder %s1093_s12, %s1094_s23  ;;  %s1099_s0 = scalar_lea.hbm %s1670_s1, 32 }
  0x22   : > { %p1100_p0 = scmp.lt.s32.totalorder %s1093_s12, %s1670_s1  ;;  %p1101_p2 = scmp.lt.s32.totalorder %s1099_s0, %s1094_s23 }
  0x23   : > { %p1097_p10 = pnand %p1096_p9, %p1095_p7 }
  0x24   : > { %p1102_p6 = por %p1101_p2, %p1100_p0 }
  0x25   : > { %p1098_p11 = pneg %p1097_p10 }
  0x27   : > { %p1103_p5 = pnand %p1102_p6, %p1098_p11 }
  0x29   : > { %1106 = shalt.err (!%p1103_p5)
}
  0x2a   : > { %1006 = dma.hbm_to_vmem [thread:$0]  (!%p1340_p8), %s361_s14, 256, %s363_s15, %s350_s19  }
  0x2b   : > { %371 = sbr.rel (%p1295_p3) target bundleno = 657 (0x291), region = 64 }
  0x30   : > { %1167 = dma.done.wait (%p70_p1), [#allocation3], 288  }
  0x31   : > { %1169 = vsyncadd (%p70_p1), [#allocation3], 4294967008  ;;  %s1361_s22 = sand.u32 1, %s1184_s18  }
  0x32   : > { %s976_s12 = sshll.u32 %s1361_s22, 4  ;;  %s379_s23 = scalar_lea.sflag [#allocation6], %s1361_s22 }
  0x33   : > { %s382_s19 = scalar_lea.vmem [#allocation5], %s976_s12 }
  0x34   : > { %1171 = dma.done.wait (%p1322_p12), %s379_s23, 256  }
  0x35   : > { %1173 = vsyncadd (%p1322_p12), %s379_s23, 4294967040  ;;  %v1371_v0 = vld [vmem:[%s382_s19] sm:$0xff]  ;;  %s1197_s25 = smov 113   ;;  %s1198_s15 = smov 111   ;;  %v1379_v1 = vld [vmem:[%s382_s19 + $0x8] sm:$0xff]  ;;  %vm557_vm0 = vcmask 916480  }
  0x36   : > { %536 = vrot.lane.b32.xlu1 %v1371_v0, %s1197_s25  ;;  %570 = vrot.lane.b32.xlu0 %v1371_v0, %s1198_s15  ;;  %s1199_s13 = smov 112   ;;  %s1200_s16 = smov 127   ;;  %v1407_v6 = vld [vmem:[#allocation2 + $0x10] sm:$0x3]  ;;  %v1409_v7 = vld [vmem:[#allocation2 + $0xe] sm:$0x3] }
  0x37   : > { %553 = vrot.lane.b32.xlu2 %v1371_v0, %s1199_s13  ;;  %s1201_s14 = smov 15   ;;  %s1202_s30 = smov 1   ;;  %v1411_v8 = vld [vmem:[#allocation2 + $0xc] sm:$0x3]  ;;  %vm540_vm1 = vcmask 924672   ;;  %vm574_vm2 = vcmask 908288  }
  0x38   : > { %s1203_s27 = smov 17   ;;  %s1204_s28 = smov 16   ;;  %v581_v9 = vperm.slane %v1407_v6, 0  ;;  %v582_v10 = vperm.slane %v1407_v6, 1  ;;  %v564_v11 = vperm.slane %v1409_v7, 0  ;;  %v565_v12 = vperm.slane %v1409_v7, 1 }
  0x39   : > { %v547_v14 = vperm.slane %v1411_v8, 0  ;;  %v548_v15 = vperm.slane %v1411_v8, 1  ;;  %v1419_v17 = vld [vmem:[#allocation2 + $0x8] sm:$0x3]  ;;  %vm602_vm3 = vcmask 1043456   ;;  %vm523_vm4 = vcmask 1039360  }
  0x3a   : > { %v1431_v26 = vld [vmem:[#allocation2 + $0xa] sm:$0x3]  ;;  %v513_v27 = vperm.slane %v1419_v17, 0  ;;  %v514_v28 = vperm.slane %v1419_v17, 1  ;;  %v635_v48 = vld [vmem:[%s1672_s3] sm:$0xff]  ;;  %v1205_v53 = vmov 0  }
  0x3b   : > { %v530_v38 = vperm.slane %v1431_v26, 0  ;;  %v531_v39 = vperm.slane %v1431_v26, 1  ;;  %v643_v49 = vld [vmem:[%s1673_s4] sm:$0xff]  ;;  %1059 = vset.pattern.permute.xlu1 %v1205_v53  ;;  %1060 = vset.pattern.permute.xlu2 %v1205_v53  ;;  %vm500_vm5 = vcmask 7168   ;;  %vm483_vm6 = vcmask 121856   ;;  %s990_s0 = sshll.u32 %s1290_s24, 4 }
  0x3c   : > { %v517_v43 = vmul.f32 %v513_v27, %v1371_v0  ;;  %v518_v44 = vmul.f32 %v514_v28, %v1379_v1  ;;  %v1465_v52 = vld [vmem:[#allocation2 + $0x6] sm:$0x3]  ;;  %v1467_v54 = vld [vmem:[#allocation2 + $0x4] sm:$0x3]  ;;  %1061 = vset.pattern.permute.xlu0 %v1205_v53  ;;  %vm449_vm7 = vcmask 138240   ;;  %vm466_vm8 = vcmask 130048  }
  0x3d   : > { %v506_v57 = vperm.slane %v1465_v52, 0  ;;  %v507_v59 = vperm.slane %v1465_v52, 1  ;;  %v489_v60 = vperm.slane %v1467_v54, 0  ;;  %v490_v61 = vperm.slane %v1467_v54, 1  ;;  %v807_v53 = vld [vmem:[%s1677_s8] sm:$0xf] }
  0x3e   : > { %538 = vrot.lane.b32.xlu1 %v1379_v1, %s1197_s25  ;;  %572 = vrot.lane.b32.xlu0 %v1379_v1, %s1198_s15  ;;  %vm598_vm9 = vcmask 588800   ;;  %vm810_vm10 = vcmask 64512   ;;  %s421_s24 = scalar_lea.vmem [#allocation7], %s976_s12 }
  0x3f   : > { %555 = vrot.lane.b32.xlu2 %v1379_v1, %s1199_s13 }
  0x46   : > { %521 = vrot.lane.b32.xlu1 %v1379_v1, %s1200_s16  ;;  %519 = vrot.lane.b32.xlu0 %v1371_v0, %s1200_s16 }
  0x47   : > { %478 = vrot.lane.b32.xlu2 %v1379_v1, %s1201_s14 }
  0x4e   : > { %495 = vrot.lane.b32.xlu1 %v1379_v1, %s1202_s30  ;;  %481 = vrot.lane.b32.xlu0 %v1371_v0, %s1201_s14 }
  0x4f   : > { %498 = vrot.lane.b32.xlu2 %v1371_v0, %s1202_s30 }
  0x56   : > { %447 = vrot.lane.b32.xlu1 %v1371_v0, %s1203_s27  ;;  %443 = vrot.lane.b32.xlu0 %v1379_v1, %s1203_s27 }
  0x57   : > { %461 = vrot.lane.b32.xlu2 %v1379_v1, %s1204_s28 }
  0x5e   : > { %464 = vrot.lane.b32.xlu0 %v1371_v0, %s1204_s28  ;;  %638 = vperm.xlu1 %1059, %v635_v48   ;;  %v808_v48 = vpack.c.bf16 %v1371_v0, %v1371_v0 }
  0x5f   : > { %646 = vperm.xlu2 %1060, %v643_v49   ;;  %v809_v49 = vpack.c.bf16 %v1379_v1, %v1379_v1 }
  0x91   : > { %v554_v2 = vpop.permute.xlu2 %553 }
  0x99   : > { %v556_v5 = vpop.permute.xlu2 %555 }
  0x9a   : > { %v558_v18 = vsel %vm557_vm0, %v554_v2, %v556_v5  ;;  %v562_v22 = vsel %vm557_vm0, %v556_v5, %v554_v2 }
  0x9b   : > { %v568_v29 = vmul.f32 %v564_v11, %v558_v18  ;;  %v569_v34 = vmul.f32 %v565_v12, %v562_v22 }
  0xa1   : > { %v479_v33 = vpop.permute.xlu2 %478 }
  0xa8   : > { %v537_v3 = vpop.permute.xlu1 %536  ;;  %v571_v4 = vpop.permute.xlu0 %570 }
  0xa9   : > { %v499_v58 = vpop.permute.xlu2 %498 }
  0xb0   : > { %v539_v13 = vpop.permute.xlu1 %538  ;;  %v573_v16 = vpop.permute.xlu0 %572 }
  0xb1   : > { %v541_v19 = vsel %vm540_vm1, %v537_v3, %v539_v13  ;;  %v575_v20 = vsel %vm574_vm2, %v571_v4, %v573_v16  ;;  %v579_v21 = vsel %vm574_vm2, %v573_v16, %v571_v4  ;;  %v545_v23 = vsel %vm540_vm1, %v539_v13, %v537_v3 }
  0xb2   : > { %v585_v24 = vmul.f32 %v581_v9, %v575_v20  ;;  %v586_v25 = vmul.f32 %v582_v10, %v579_v21  ;;  %v551_v30 = vmul.f32 %v547_v14, %v541_v19  ;;  %v552_v35 = vmul.f32 %v548_v15, %v545_v23  ;;  %v1485_v23 = vld [vmem:[#allocation2] sm:$0x3] }
  0xb4   : > { %v595_v31 = vpack.c.bf16 %v585_v24, %v585_v24  ;;  %v596_v32 = vpack.c.bf16 %v586_v25, %v586_v25  ;;  %v593_v42 = vpack.c.bf16 %v568_v29, %v551_v30  ;;  %v594_v47 = vpack.c.bf16 %v569_v34, %v552_v35  ;;  %v1487_v24 = vld [vmem:[#allocation2 + $0x2] sm:$0x3] }
  0xb5   : > { %v455_v29 = vperm.slane %v1485_v23, 0  ;;  %v456_v30 = vperm.slane %v1485_v23, 1 }
  0xb6   : > { %v604_v36 = vsel %vm602_vm3, %v595_v31, 0  ;;  %v607_v37 = vsel %vm602_vm3, %v596_v32, 0  ;;  %v462_v31 = vpop.permute.xlu2 %461  ;;  %v472_v32 = vperm.slane %v1487_v24, 0 }
  0xb7   : > { %612 = vmatpush.bf16.msra.mxu0 %v604_v36  ;;  %625 = vmatpush.bf16.msra.mxu1 %v607_v37 }
  0xb8   : > { %v522_v40 = vpop.permute.xlu1 %521  ;;  %v520_v41 = vpop.permute.xlu0 %519 }
  0xb9   : > { %v524_v45 = vsel %vm523_vm4, %v520_v41, %v522_v40  ;;  %v528_v46 = vsel %vm523_vm4, %v522_v40, %v520_v41 }
  0xba   : > { %v534_v50 = vmul.f32 %v530_v38, %v524_v45  ;;  %v535_v51 = vmul.f32 %v531_v39, %v528_v46 }
  0xbb   : > { %613 = vmatpush.bf16.msra.mxu0 %v593_v42  ;;  %626 = vmatpush.bf16.msra.mxu1 %v594_v47  ;;  %v597_v47 = vld [vmem:[%s1671_s2] sm:$0xf] }
  0xbc   : > { %v591_v55 = vpack.c.bf16 %v534_v50, %v517_v43  ;;  %v592_v56 = vpack.c.bf16 %v535_v51, %v518_v44  ;;  %v815_v50 = vsel %vm602_vm3, %v808_v48, 0  ;;  %v818_v51 = vsel %vm602_vm3, %v809_v49, 0 }
  0xbf   : > { %614 = vmatpush.bf16.msra.mxu0 %v591_v55  ;;  %627 = vmatpush.bf16.msra.mxu1 %v592_v56  ;;  %v647_v56 = vpop.permute.xlu2 %646 }
  0xc0   : > { %v496_v62 = vpop.permute.xlu1 %495  ;;  %v482_v63 = vpop.permute.xlu0 %481 }
  0xc1   : > { %v501_v2 = vsel %vm500_vm5, %v499_v58, %v496_v62  ;;  %v504_v3 = vsel %vm500_vm5, %v496_v62, %v499_v58  ;;  %v484_v4 = vsel %vm483_vm6, %v482_v63, %v479_v33  ;;  %v487_v5 = vsel %vm483_vm6, %v479_v33, %v482_v63 }
  0xc2   : > { %v510_v13 = vmul.f32 %v506_v57, %v504_v3  ;;  %v511_v16 = vmul.f32 %v507_v59, %v501_v2  ;;  %v493_v18 = vmul.f32 %v489_v60, %v487_v5  ;;  %v494_v19 = vmul.f32 %v490_v61, %v484_v4 }
  0xc3   : > { %v473_v33 = vperm.slane %v1487_v24, 1 }
  0xc4   : > { %v589_v20 = vpack.c.bf16 %v510_v13, %v493_v18  ;;  %v590_v21 = vpack.c.bf16 %v511_v16, %v494_v19  ;;  %v791_v16 = vld [vmem:[%s1675_s6] sm:$0xff] }
  0xc5   : > { %v846_v18 = vld [vmem:[%s1678_s9] sm:$0xff] }
  0xc6   : > { %615 = vmatpush.bf16.msra.mxu0 %v589_v20  ;;  %628 = vmatpush.bf16.msra.mxu1 %v590_v21  ;;  %v854_v19 = vld [vmem:[%s1679_s10] sm:$0xff] }
  0xc8   : > { %v444_v22 = vpop.permute.xlu0 %443  ;;  %v448_v25 = vpop.permute.xlu1 %447 }
  0xc9   : > { %v450_v34 = vsel %vm449_vm7, %v448_v25, %v444_v22  ;;  %v453_v35 = vsel %vm449_vm7, %v444_v22, %v448_v25 }
  0xca   : > { %v459_v41 = vmul.f32 %v455_v29, %v453_v35  ;;  %v460_v42 = vmul.f32 %v456_v30, %v450_v34 }
  0xd0   : > { %v465_v36 = vpop.permute.xlu0 %464  ;;  %v639_v55 = vpop.permute.xlu1 %638 }
  0xd1   : > { %v467_v37 = vsel %vm466_vm8, %v465_v36, %v462_v31  ;;  %v470_v40 = vsel %vm466_vm8, %v462_v31, %v465_v36 }
  0xd2   : > { %v476_v43 = vmul.f32 %v472_v32, %v470_v40  ;;  %v477_v44 = vmul.f32 %v473_v33, %v467_v37 }
  0xd4   : > { %v587_v45 = vpack.c.bf16 %v476_v43, %v459_v41  ;;  %v588_v46 = vpack.c.bf16 %v477_v44, %v460_v42 }
  0xd6   : > { %616 = vmatpush.bf16.msra.mxu0 %v587_v45  ;;  %629 = vmatpush.bf16.msra.mxu1 %v588_v46 }
  0xd9   : > { %978 = vmatmul.msk.bf16.vlgmr.msra.gmra.mxu0 %vm598_vm9, %v597_v47  ;;  %979 = vmatmul.msk.bf16.vlgmr.msra.gmra.mxu1 %vm598_vm9, %v597_v47 }
  0xda   : > { %827 = vmatpush.bf16.msrb.mxu0 %v815_v50  ;;  %840 = vmatpush.bf16.msrb.mxu1 %v818_v51 }
  0xe9   : > { %982 = vmatmul.msk.bf16.vlgmr.msrb.gmra.mxu0 %vm810_vm10, %v807_v53  ;;  %983 = vmatmul.msk.bf16.vlgmr.msrb.gmra.mxu1 %vm810_vm10, %v807_v53 }
 0x156   : > { %v618_v58 = vpop.f32.mrf.mxu0  ;;  %v631_v0 = vpop.f32.mrf.mxu1 }
 0x157   : > { %v641_v62 = vmul.f32 %v639_v55, %v618_v58  ;;  %v642_v63 = vmul.f32 %v639_v55, %v631_v0 }
 0x159   : > { %v649_v1 = vadd.f32 %v647_v56, %v641_v62  ;;  %v650_v2 = vadd.f32 %v647_v56, %v642_v63  ;;  %v799_v63 = vld [vmem:[%s1676_s7] sm:$0xff] }
 0x15b   : > { %v1519_v3 = vmax.f32 %v649_v1, 0.0  ;;  %v1521_v4 = vmax.f32 %v650_v2, 0.0 }
 0x15d   : > { %736 = vrot.lane.b32.xlu1 %v1521_v4, %s1198_s15  ;;  %712 = vrot.lane.b32.xlu2 %v1519_v3, %s1197_s25  ;;  %v700_v1 = vmul.f32 %v1521_v4, %v514_v28 }
 0x15e   : > { %734 = vrot.lane.b32.xlu0 %v1519_v3, %s1198_s15  ;;  %v620_v5 = vpop.f32.mrf.mxu0  ;;  %v633_v13 = vpop.f32.mrf.mxu1  ;;  %s882_s15 = sshll.u32 %s421_s24, 4  ;;  %s883_s15 = int_to_ptr.vmem [resolvable:$true] %s882_s15 }
 0x165   : > { %723 = vrot.lane.b32.xlu1 %v1519_v3, %s1199_s13  ;;  %725 = vrot.lane.b32.xlu2 %v1521_v4, %s1199_s13 }
 0x166   : > { %714 = vrot.lane.b32.xlu0 %v1521_v4, %s1197_s25  ;;  %v1564_v20 = vpop.f32.mrf.mxu1  ;;  %v1566_v21 = vpop.f32.mrf.mxu0  ;;  %s880_s25 = scalar_lea.hbm %s1680_s11, %s990_s0 }
 0x167   : > { %s884_s13 = sshll.u32 %s880_s25, 4  ;;  %s885_s13 = int_to_ptr.hbm [resolvable:$true] %s884_s13 }
 0x16d   : > { %703 = vrot.lane.b32.xlu1 %v1521_v4, %s1200_s16  ;;  %677 = vrot.lane.b32.xlu2 %v1521_v4, %s1201_s14 }
 0x16e   : > { %701 = vrot.lane.b32.xlu0 %v1519_v3, %s1200_s16  ;;  %v831_v22 = vpop.f32.mrf.mxu0  ;;  %v844_v25 = vpop.f32.mrf.mxu1  ;;  %s869_s16 = scalar_lea.sflag [#allocation4], %s1361_s22 }
 0x175   : > { %688 = vrot.lane.b32.xlu1 %v1521_v4, %s1202_s30  ;;  %691 = vrot.lane.b32.xlu2 %v1519_v3, %s1202_s30 }
 0x176   : > { %680 = vrot.lane.b32.xlu0 %v1519_v3, %s1201_s14  ;;  %s1136_s14 = sshra.s32 %s885_s13, 4  ;;  %s1137_s14 = int_to_ptr.hbm [resolvable:$true] %s1136_s14 }
 0x177   : > { %s1138_s30 = scalar_lea.hbm %s1137_s14, 16  ;;  %p1143_p12 = scmp.lt.s32.totalorder %s1137_s14, %s1680_s11 }
 0x178   : > { %p1139_p1 = scmp.ne.s32.totalorder %s1137_s14, %s1138_s30 }
 0x17a   : > { %p1140_p3 = pnand %p1139_p1, %p1326_p13 }
 0x17c   : > { %p1141_p5 = pneg %p1140_p3 }
 0x17d   : > { %658 = vrot.lane.b32.xlu1 %v1519_v3, %s1203_s27  ;;  %666 = vrot.lane.b32.xlu2 %v1521_v4, %s1204_s28 }
 0x17e   : > { %654 = vrot.lane.b32.xlu0 %v1521_v4, %s1203_s27 }
 0x185   : > { %794 = vperm.xlu1 %1059, %v791_v16   ;;  %849 = vperm.xlu2 %1060, %v846_v18  }
 0x186   : > { %669 = vrot.lane.b32.xlu0 %v1519_v3, %s1204_s28  ;;  %s1142_s28 = scalar_lea.hbm %s1680_s11, 32 }
 0x187   : > { %p1144_p8 = scmp.lt.s32.totalorder %s1142_s28, %s1138_s30 }
 0x189   : > { %p1145_p7 = por %p1144_p8, %p1143_p12 }
 0x18b   : > { %p1146_p9 = pnand %p1145_p7, %p1141_p5 }
 0x18d   : > { %857 = vperm.xlu1 %1059, %v854_v19  }
 0x18e   : > { %802 = vperm.xlu0 %1061, %v799_v63  }
 0x1b7   : > { %v713_v31 = vpop.permute.xlu2 %712 }
 0x1bf   : > { %v726_v42 = vpop.permute.xlu2 %725 }
 0x1c7   : > { %v678_v0 = vpop.permute.xlu2 %677 }
 0x1cf   : > { %v737_v34 = vpop.permute.xlu1 %736  ;;  %v692_v13 = vpop.permute.xlu2 %691 }
 0x1d0   : > { %v735_v35 = vpop.permute.xlu0 %734 }
 0x1d1   : > { %v738_v36 = vsel %vm574_vm2, %v735_v35, %v737_v34  ;;  %v742_v37 = vsel %vm574_vm2, %v737_v34, %v735_v35 }
 0x1d2   : > { %v743_v40 = vmul.f32 %v738_v36, %v581_v9  ;;  %v744_v41 = vmul.f32 %v742_v37, %v582_v10 }
 0x1d4   : > { %v753_v43 = vpack.c.bf16 %v743_v40, %v743_v40  ;;  %v754_v44 = vpack.c.bf16 %v744_v41, %v744_v41 }
 0x1d6   : > { %v760_v45 = vsel %vm602_vm3, %v753_v43, 0  ;;  %v763_v46 = vsel %vm602_vm3, %v754_v44, 0 }
 0x1d7   : > { %768 = vmatpush.bf16.msra.mxu2 %v760_v45  ;;  %781 = vmatpush.bf16.msra.mxu3 %v763_v46  ;;  %v724_v47 = vpop.permute.xlu1 %723 }
 0x1d8   : > { %v727_v48 = vsel %vm557_vm0, %v724_v47, %v726_v42  ;;  %v731_v49 = vsel %vm557_vm0, %v726_v42, %v724_v47  ;;  %v715_v50 = vpop.permute.xlu0 %714  ;;  %v755_v42 = vld [vmem:[%s1674_s5] sm:$0xf] }
 0x1d9   : > { %v732_v9 = vmul.f32 %v727_v48, %v564_v11  ;;  %v733_v6 = vmul.f32 %v731_v49, %v565_v12  ;;  %v716_v10 = vsel %vm540_vm1, %v713_v31, %v715_v50  ;;  %v720_v51 = vsel %vm540_vm1, %v715_v50, %v713_v31 }
 0x1da   : > { %v721_v53 = vmul.f32 %v716_v10, %v547_v14  ;;  %v722_v55 = vmul.f32 %v720_v51, %v548_v15  ;;  %v699_v15 = vmul.f32 %v1519_v3, %v513_v27 }
 0x1dc   : > { %v751_v56 = vpack.c.bf16 %v732_v9, %v721_v53  ;;  %v752_v58 = vpack.c.bf16 %v733_v6, %v722_v55 }
 0x1de   : > { %769 = vmatpush.bf16.msra.mxu2 %v751_v56  ;;  %782 = vmatpush.bf16.msra.mxu3 %v752_v58 }
 0x1df   : > { %v704_v62 = vpop.permute.xlu1 %703 }
 0x1e0   : > { %v702_v11 = vpop.permute.xlu0 %701 }
 0x1e1   : > { %v705_v7 = vsel %vm523_vm4, %v702_v11, %v704_v62  ;;  %v709_v12 = vsel %vm523_vm4, %v704_v62, %v702_v11 }
 0x1e2   : > { %v710_v14 = vmul.f32 %v705_v7, %v530_v38  ;;  %v711_v8 = vmul.f32 %v709_v12, %v531_v39 }
 0x1e4   : > { %v749_v2 = vpack.c.bf16 %v710_v14, %v699_v15  ;;  %v750_v5 = vpack.c.bf16 %v711_v8, %v700_v1 }
 0x1e6   : > { %770 = vmatpush.bf16.msra.mxu2 %v749_v2  ;;  %783 = vmatpush.bf16.msra.mxu3 %v750_v5 }
 0x1e7   : > { %v689_v16 = vpop.permute.xlu1 %688 }
 0x1e8   : > { %v693_v38 = vsel %vm500_vm5, %v692_v13, %v689_v16  ;;  %v696_v26 = vsel %vm500_vm5, %v689_v16, %v692_v13  ;;  %v681_v39 = vpop.permute.xlu0 %680 }
 0x1e9   : > { %v697_v18 = vmul.f32 %v696_v26, %v506_v57  ;;  %v698_v17 = vmul.f32 %v693_v38, %v507_v59  ;;  %v682_v27 = vsel %vm483_vm6, %v681_v39, %v678_v0  ;;  %v685_v28 = vsel %vm483_vm6, %v678_v0, %v681_v39  ;;  %v667_v59 = vpop.permute.xlu2 %666 }
 0x1ea   : > { %v686_v3 = vmul.f32 %v685_v28, %v489_v60  ;;  %v687_v4 = vmul.f32 %v682_v27, %v490_v61 }
 0x1ec   : > { %v747_v19 = vpack.c.bf16 %v697_v18, %v686_v3  ;;  %v748_v22 = vpack.c.bf16 %v698_v17, %v687_v4 }
 0x1ee   : > { %771 = vmatpush.bf16.msra.mxu2 %v747_v19  ;;  %784 = vmatpush.bf16.msra.mxu3 %v748_v22 }
 0x1ef   : > { %v659_v31 = vpop.permute.xlu1 %658 }
 0x1f0   : > { %v655_v25 = vpop.permute.xlu0 %654 }
 0x1f1   : > { %v660_v57 = vsel %vm449_vm7, %v659_v31, %v655_v25  ;;  %v663_v52 = vsel %vm449_vm7, %v655_v25, %v659_v31 }
 0x1f2   : > { %v664_v54 = vmul.f32 %v663_v52, %v455_v29  ;;  %v665_v60 = vmul.f32 %v660_v57, %v456_v30  ;;  %v850_v29 = vpop.permute.xlu2 %849 }
 0x1f3   : > { %v853_v43 = vmul.f32 %v850_v29, %v1564_v20  ;;  %v852_v44 = vmul.f32 %v850_v29, %v1566_v21 }
 0x1f7   : > { %v795_v23 = vpop.permute.xlu1 %794 }
 0x1f8   : > { %v670_v34 = vpop.permute.xlu0 %669 }
 0x1f9   : > { %v671_v35 = vsel %vm466_vm8, %v670_v34, %v667_v59  ;;  %v674_v36 = vsel %vm466_vm8, %v667_v59, %v670_v34 }
 0x1fa   : > { %v675_v61 = vmul.f32 %v674_v36, %v472_v32  ;;  %v676_v37 = vmul.f32 %v671_v35, %v473_v33 }
 0x1fc   : > { %v745_v40 = vpack.c.bf16 %v675_v61, %v664_v54  ;;  %v746_v41 = vpack.c.bf16 %v676_v37, %v665_v60 }
 0x1fe   : > { %772 = vmatpush.bf16.msra.mxu2 %v745_v40  ;;  %785 = vmatpush.bf16.msra.mxu3 %v746_v41 }
 0x1ff   : > { %v858_v30 = vpop.permute.xlu1 %857 }
 0x200   : > { %v803_v32 = vpop.permute.xlu0 %802  ;;  %v860_v47 = vadd.f32 %v858_v30, %v852_v44  ;;  %v861_v48 = vadd.f32 %v858_v30, %v853_v43 }
 0x201   : > { %980 = vmatmul.msk.bf16.vlgmr.msra.gmra.mxu2 %vm598_vm9, %v755_v42  ;;  %981 = vmatmul.msk.bf16.vlgmr.msra.gmra.mxu3 %vm598_vm9, %v755_v42 }
 0x284   : > { %v774_v24 = vpop.f32.mrf.mxu2  ;;  %v787_v33 = vpop.f32.mrf.mxu3 }
 0x285   : > { %v797_v45 = vmul.f32 %v795_v23, %v774_v24  ;;  %v798_v46 = vmul.f32 %v795_v23, %v787_v33 }
 0x287   : > { %v805_v49 = vadd.f32 %v803_v32, %v797_v45  ;;  %v806_v50 = vadd.f32 %v803_v32, %v798_v46 }
 0x289   : > { %v862_v9 = vadd.f32 %v860_v47, %v805_v49  ;;  %v863_v6 = vadd.f32 %v861_v48, %v806_v50 }
 0x28b   : > { %v864_v20 = vmax.f32 %v862_v9, 0.0  ;;  %v865_v21 = vmax.f32 %v863_v6, 0.0 }
 0x28c   : > { %v776_v10 = vpop.f32.mrf.mxu2  ;;  %v789_v51 = vpop.f32.mrf.mxu3 }
 0x28d   : > { %866 = vst [vmem:[%s421_s24] sm:$0xff] %v864_v20 }
 0x28e   : > { %867 = vst [vmem:[%s421_s24 + $0x8] sm:$0xff] %v865_v21 }
 0x28f   : > { %1149 = shalt.err (!%p1146_p9)
}
 0x290   : > { %997 = dma.vmem_to_hbm [thread:$0]  (%p1326_p13), %s883_s15, 256, %s885_s13, %s869_s16  }
 0x291 PF: > { %s896_s0 = sand.u32 1, %s1180_s17   ;;  %p1697_p10 = scmp.ge.s32.totalorder %s1192_s20, 2 }
 0x292   : > { %s897_s26 = scalar_lea.sflag [#allocation4], %s896_s0 }
 0x293   : > { %p1008_p11 = pnand %p1697_p10, %p1331_p4 }
 0x295   : > { %p1009_p0 = pneg %p1008_p11 }
 0x297   : > { %1175 = dma.done.wait (%p1009_p0), %s897_s26, 256  }
 0x298   : > { %1177 = vsyncadd (%p1009_p0), %s897_s26, 4294967040  ;;  %s1698_s20 = sld [smem:[#allocation12_spill]]  ;;  %s1701_s17 = smov %s1184_s18 }
 0x299   : > { %s1699_s29 = sld [smem:[#allocation11_spill]] }
 0x29a   : > { %s1700_s19 = sld [smem:[#allocation13_spill]] }
 0x29e   : > { %p25_p2 = scmp.ge.s32.totalorder %s1698_s20, 4  }
 0x29f   : > { %s1702_s18 = smov %s1699_s29 }
 0x2a0   :  { %27 = sbr.rel (!%p25_p2) target bundleno = 8 (0x8), region = 122 }
 0x2a5   :  { %903 = vsyncpa [#allocation3], 1 }
 0x2a6   :  { %905 = vsyncpa [#allocation3 + $0x1], 1 }
 0x2a7   :  { %906 = vsyncpa [#allocation6], 1 }
 0x2a8   :  { %908 = vsyncpa [#allocation6 + $0x1], 1 }
 0x2a9   :  { %909 = vsyncpa [#allocation4], 1 }
 0x2aa   :  { %911 = vsyncpa [#allocation4 + $0x1], 1 }

</bundles_post_ra>
